<compile_context>
chip_gen: v5e
topology: v5e:2x2
jax: 0.10.0
libtpu: 0.0.40
codegen_flags: <defaults>
</compile_context>

<pallas_src>
import jax
import jax.numpy as jnp
from jax.experimental import pallas as pl
from jax.experimental.pallas import tpu as pltpu

LANES = 128          # lane-dense last dim (one vreg of lanes, unmasked stores)
TM_TARGET = 1024     # rows per tile -> 1024*128*4B = 512 KiB per f32 buffer


def _normalize_kernel(stats_ref, x_ref, o_ref):
    # stats_ref: SMEM f32[2] = (mean, inv_std)
    mean = stats_ref[0]
    inv_std = stats_ref[1]
    xv = x_ref[...].astype(jnp.float32)
    o_ref[...] = ((xv - mean) * inv_std).astype(o_ref.dtype)


def normalize0_forward(x, mean, std):
    """Pallas implementation of Normalize0_layer.forward: (x - mean) / std."""
    orig_shape = x.shape
    orig_dtype = x.dtype
    total = x.size
    itemsize = jnp.dtype(orig_dtype).itemsize

    # Flatten and pad to a whole number of (tm, LANES) tiles.
    rows_needed = pl.cdiv(total, LANES)
    tm = TM_TARGET if rows_needed >= TM_TARGET else rows_needed
    rows = pl.cdiv(rows_needed, tm) * tm
    padded_total = rows * LANES

    flat = x.reshape(-1)
    if padded_total != total:
        flat = jnp.pad(flat, (0, padded_total - total))
    x2d = flat.reshape(rows, LANES)

    # Precompute reciprocal of std so the kernel only does a sub + mul on the VPU.
    stats = jnp.stack(
        [jnp.asarray(mean, jnp.float32), 1.0 / jnp.asarray(std, jnp.float32)]
    )

    grid = (rows // tm,)
    cost = pl.CostEstimate(
        flops=2 * total,
        transcendentals=0,
        bytes_accessed=2 * total * itemsize,
    )

    out = pl.pallas_call(
        _normalize_kernel,
        out_shape=jax.ShapeDtypeStruct((rows, LANES), orig_dtype),
        grid_spec=pl.GridSpec(
            grid=grid,
            in_specs=[
                pl.BlockSpec(memory_space=pltpu.MemorySpace.SMEM),
                pl.BlockSpec((tm, LANES), lambda i: (i, 0)),
            ],
            out_specs=pl.BlockSpec((tm, LANES), lambda i: (i, 0)),
        ),
        compiler_params=pltpu.CompilerParams(
            dimension_semantics=("parallel",),
        ),
        cost_estimate=cost,
    )(stats, x2d)

    out_flat = out.reshape(-1)
    if padded_total != total:
        out_flat = out_flat[:total]
    return out_flat.reshape(orig_shape)


if __name__ == "__main__":
    key = jax.random.PRNGKey(0)
    k0, k1 = jax.random.split(key)

    # "Training data" X0 used in __init__ to derive mean/std parameters.
    X0 = jax.random.normal(k0, (2, 4, 16, 16), dtype=jnp.float32) * 3.0 + 1.5
    # PyTorch .mean() / .std() over all elements; .std() is unbiased (ddof=1).
    mean = jnp.mean(X0)
    std = jnp.std(X0, ddof=1)

    # Forward input.
    x = jax.random.normal(k1, (2, 4, 16, 16), dtype=jnp.float32)

    y = normalize0_forward(x, mean, std)
    y = jax.block_until_ready(y)

    # Reference check (pure JAX).
    ref = (x - mean) / std
    assert jnp.allclose(y, ref, atol=1e-5, rtol=1e-5), "mismatch vs reference"

    print("KERNEL_OK")
</pallas_src>

<mosaic_0001>
module attributes {stable_mosaic.version = 11 : i64} {
  func.func @_normalize_kernel(%arg0: i32, %arg1: memref<2xf32, #tpu.memory_space<smem>>, %arg2: memref<16x128xf32, #tpu.memory_space<vmem>>, %arg3: memref<16x128xf32, #tpu.memory_space<vmem>>) attributes {dimension_semantics = [#tpu.dimension_semantics<parallel>], iteration_bounds = array<i64: 1>, scalar_prefetch = 0 : i64, scratch_operands = 0 : i64, tpu.core_type = #tpu.core_type<tc>, window_params = [{transform_indices = @transform_0, window_bounds = array<i64: 2>}, {transform_indices = @transform_1, window_bounds = array<i64: 16, 128>}, {transform_indices = @transform_2, window_bounds = array<i64: 16, 128>}]} {
    %c0 = arith.constant 0 : index
    %0 = memref.load %arg1[%c0] : memref<2xf32, #tpu.memory_space<smem>>
    %c1 = arith.constant 1 : index
    %1 = memref.load %arg1[%c1] : memref<2xf32, #tpu.memory_space<smem>>
    %c0_0 = arith.constant 0 : index
    %c0_1 = arith.constant 0 : index
    %2 = vector.load %arg2[%c0_0, %c0_1] : memref<16x128xf32, #tpu.memory_space<vmem>>, vector<16x128xf32>
    %3 = vector.broadcast %0 : f32 to vector<16x128xf32>
    %4 = arith.subf %2, %3 : vector<16x128xf32>
    %5 = vector.broadcast %1 : f32 to vector<16x128xf32>
    %6 = arith.mulf %4, %5 : vector<16x128xf32>
    %c0_2 = arith.constant 0 : index
    %c0_3 = arith.constant 0 : index
    %7 = vector.load %arg3[%c0_2, %c0_3] : memref<16x128xf32, #tpu.memory_space<vmem>>, vector<16x128xf32>
    tpu.vector_store %arg3[%c0_2, %c0_3], %6 {strides = array<i32>} : memref<16x128xf32, #tpu.memory_space<vmem>>, vector<16x128xf32>,
    return
  }
  func.func @transform_0(%arg0: i32) -> i32 {
    %c0_i32 = arith.constant 0 : i32
    %c0_i32_0 = arith.constant 0 : i32
    return %c0_i32 : i32
  }
  func.func @transform_1(%arg0: i32) -> (i32, i32) {
    %c0_i32 = arith.constant 0 : i32
    %c0_i32_0 = arith.constant 0 : i32
    return %arg0, %c0_i32 : i32, i32
  }
  func.func @transform_2(%arg0: i32) -> (i32, i32) {
    %c0_i32 = arith.constant 0 : i32
    %c0_i32_0 = arith.constant 0 : i32
    return %arg0, %c0_i32 : i32, i32
  }
}

</mosaic_0001>

<bundles_post_ra>
// kernel: tpu_custom_call.1
= control target key start
LH: loop header
LB: loop body
LE: loop exit
PB: predicated region body
PF: predicated region fallthrough
CT: control target
= control target key end

     0   :  { %7 = vsyncpa [#allocation5], 0  ;;  %s174_s0 = inlined_call_operand.hbm [shape: f32[2], index: 0, kind: input, shape index: {}]   ;;  %s175_s1 = inlined_call_operand.hbm [shape: f32[16,128], index: 1, kind: input, shape index: {}]   ;;  %s176_s2 = inlined_call_operand.hbm [shape: f32[16,128], index: 2, kind: output, shape index: {}]  }
   0x1   :  { %8 = vsyncpa [#allocation3], 0 }
   0x2   :  { %9 = vsyncpa [#allocation4], 0  ;;  %s15_s11 = sshll.u32 %s174_s0, 4  ;;  %s23_s14 = sshll.u32 %s175_s1, 4  ;;  %s16_s11 = int_to_ptr.hbm [resolvable:$true] %s15_s11  ;;  %s24_s14 = int_to_ptr.hbm [resolvable:$true] %s23_s14 }
   0x3   :  { %s145_s15 = smov [#allocation2]   ;;  %s146_s16 = smov [#allocation6]  }
   0x4   :  { %18 = dma.hbm_to_smem %s16_s11, 16, %s145_s15, [#allocation5]  }
   0x5   :  { %s25_s17 = sshll.u32 %s146_s16, 4  ;;  %s147_s18 = smov 128   ;;  %s26_s17 = int_to_ptr.vmem [resolvable:$true] %s25_s17 }
   0x6   :  { %s148_s19 = smov 8  }
   0x7   :  { %31 = dma.hbm_to_vmem [thread:$0]  %s24_s14, 256, %s26_s17, [#allocation3], %s147_s18, %s147_s18, %s148_s19  }
   0x8   :  { %139 = dma.done.wait [#allocation5], 16  }
   0x9   :  { %140 = vsyncadd [#allocation5], 4294967280 }
   0xa   :  { %141 = dma.done.wait [#allocation3], 256  }
   0xb   :  { %142 = vsyncadd [#allocation3], 4294967040 }
   0xc   :  { %40 = sfence }
   0xd   :  { %s41_s0 = sld [smem:[#allocation2]]  ;;  %v43_v0 = vld [vmem:[#allocation6] sm:$0xff]  ;;  %v44_v1 = vld [vmem:[#allocation6 + $0x8] sm:$0xff]  ;;  %s149_s1 = smov [#allocation7]  }
   0xe   :  { %s73_s20 = sld [smem:[#allocation2 + $0x1]]  ;;  %s57_s21 = sshll.u32 %s149_s1, 4  ;;  %s58_s21 = int_to_ptr.vmem [resolvable:$true] %s57_s21 }
   0xf   :  { %s59_s24 = sshll.u32 %s176_s2, 4  ;;  %s60_s24 = int_to_ptr.hbm [resolvable:$true] %s59_s24 }
  0x13   :  { %v45_v2 = vstv %s41_s0 }
  0x14   :  { %v46_v3 = vsub.f32 %v43_v0, %v45_v2  ;;  %v48_v4 = vstv %s73_s20  ;;  %v47_v5 = vsub.f32 %v44_v1, %v45_v2 }
  0x16   :  { %v49_v6 = vmul.f32 %v48_v4, %v46_v3  ;;  %v50_v7 = vmul.f32 %v48_v4, %v47_v5 }
  0x18   :  { %51 = vst [vmem:[#allocation7] sm:$0xff] %v49_v6 }
  0x19   :  { %52 = vst [vmem:[#allocation7 + $0x8] sm:$0xff] %v50_v7 }
  0x1a   :  { %65 = dma.vmem_to_hbm [thread:$0]  %s58_s21, 256, %s60_s24, [#allocation4], %s147_s18, %s147_s18, %s148_s19  }
  0x1b   :  { %143 = dma.done.wait [#allocation4], 256  }
  0x1c   :  { %144 = vsyncadd [#allocation4], 4294967040 }
  0x1d   :  { %70 = vsyncpa [#allocation3], 1 }
  0x1e   :  { %71 = vsyncpa [#allocation4], 1 }
  0x1f   :  { %72 = vsyncpa [#allocation5], 1 }

</bundles_post_ra>
